<compile_context>
chip_gen: v6e
topology: v6e:2x2x1
jax: 0.10.0
libtpu: 0.0.40
codegen_flags: <defaults>
</compile_context>

<pallas_src>
import math
import jax
import jax.numpy as jnp
from jax import lax
from jax.experimental import pallas as pl
from jax.experimental.pallas import tpu as pltpu


def lstm_kernel(x_ref, wih_ref, whh_ref, wl_ref, small_ref, out_ref):
    T, _ = x_ref.shape
    H = whh_ref.shape[0]
    O = wl_ref.shape[1]

    # ---- unpack the packed small-operand slab (one DMA instead of four) ----
    b = small_ref[0:1, :]            # (1, 4H) fused LSTM bias (b_ih + b_hh)
    bl = small_ref[1:2, 0:O]         # (1, O)  linear bias
    h0 = small_ref[2:3, 0:H]         # (1, H)
    c0 = small_ref[3:4, 0:H]         # (1, H)

    # ---- hoisted, non-recurrent input projection; register-resident ----
    # bf16 MXU operands, f32 accumulate.  (T, 4H) = (8, 128) f32 == one vreg.
    xp = jnp.dot(x_ref[...].astype(jnp.bfloat16),
                 wih_ref[...].astype(jnp.bfloat16),
                 preferred_element_type=jnp.float32) + b

    # ---- single-tanh activation constants (hoisted out of the loop) ----
    # sigmoid(x) = 0.5*tanh(0.5*x) + 0.5, so one full-width tanh covers all gates:
    #   g lanes [2H,3H):  scale=1,   amul=1,   aadd=0   -> tanh(z)
    #   i/f/o lanes:      scale=0.5, amul=0.5, aadd=0.5 -> sigmoid(z)
    lane = lax.broadcasted_iota(jnp.int32, (1, 4 * H), 1)
    g_mask = (lane >= 2 * H) & (lane < 3 * H)
    scale = jnp.where(g_mask, 1.0, 0.5)
    amul = jnp.where(g_mask, 1.0, 0.5)
    aadd = jnp.where(g_mask, 0.0, 0.5)

    whh_bf = whh_ref[...].astype(jnp.bfloat16)   # (H, 4H) cast once, vreg-resident

    h = h0
    c = c0
    h_rows = []
    # Static unroll (T = 8): no VMEM loads/stores on the recurrent critical path.
    for t in range(T):
        # One bf16 MXU matmul per step; z accumulates onto xp[t] (MRB-friendly).
        z = xp[t:t + 1, :] + jnp.dot(h.astype(jnp.bfloat16), whh_bf,
                                     preferred_element_type=jnp.float32)
        act = amul * jnp.tanh(z * scale) + aadd        # one EUP tanh per step
        i_g = act[:, 0:H]
        f_g = act[:, H:2 * H]
        g_g = act[:, 2 * H:3 * H]
        o_g = act[:, 3 * H:4 * H]
        c = f_g * c + i_g * g_g
        h = o_g * jnp.tanh(c)
        h_rows.append(h)

    h_all = jnp.concatenate(h_rows, axis=0)            # (T, H) register value

    # ---- Linear head, batched over time; single output store ----
    out_ref[...] = (jnp.dot(h_all.astype(jnp.bfloat16),
                            wl_ref[...].astype(jnp.bfloat16),
                            preferred_element_type=jnp.float32)
                    + bl)


def my_lstm_forward(x, wih_f, whh_f, wl, small):
    """x: (T, I) f32.  wih_f: (I, 4H), whh_f: (H, 4H) fused in PyTorch i,f,g,o order.
    wl: (H, O) (Linear weight transposed).  small: (8, 4H) packed slab with
    row0 = b_ih+b_hh, row1[:O] = linear bias, row2[:H] = h0, row3[:H] = c0.
    Returns (T, O) f32."""
    T, I = x.shape
    H = whh_f.shape[0]
    O = wl.shape[1]
    return pl.pallas_call(
        lstm_kernel,
        out_shape=jax.ShapeDtypeStruct((T, O), jnp.float32),
        grid_spec=pltpu.PrefetchScalarGridSpec(
            num_scalar_prefetch=0,
            grid=(1,),                                        # single invocation
            in_specs=[
                pl.BlockSpec((T, I), lambda i: (0, 0)),       # x (whole sequence)
                pl.BlockSpec((I, 4 * H), lambda i: (0, 0)),   # fused W_ih
                pl.BlockSpec((H, 4 * H), lambda i: (0, 0)),   # fused W_hh
                pl.BlockSpec((H, O), lambda i: (0, 0)),       # linear weight^T
                pl.BlockSpec((8, 4 * H), lambda i: (0, 0)),   # packed small slab
            ],
            out_specs=pl.BlockSpec((T, O), lambda i: (0, 0)),
        ),
        compiler_params=pltpu.CompilerParams(
            dimension_semantics=("arbitrary",)),
    )(x, wih_f, whh_f, wl, small)


def reference_forward(x, wih_f, whh_f, b_f, wl, bl, h0, c0):
    """Pure-JAX f32 reference of the module math (lax.scan over time)."""
    H = h0.shape[1]

    def step(carry, x_t):
        h, c = carry
        z = x_t[None, :] @ wih_f + h @ whh_f + b_f
        i = jax.nn.sigmoid(z[:, 0:H])
        f = jax.nn.sigmoid(z[:, H:2 * H])
        g = jnp.tanh(z[:, 2 * H:3 * H])
        o = jax.nn.sigmoid(z[:, 3 * H:4 * H])
        c = f * c + i * g
        h = o * jnp.tanh(c)
        y = h @ wl + bl
        return (h, c), y[0]

    (_, _), ys = lax.scan(step, (h0, c0), x)
    return ys


if __name__ == "__main__":
    # Small shapes consistent with the module: input=16, hidden=32, output=8, seq=8.
    T, I, H, O = 8, 16, 32, 8

    key = jax.random.PRNGKey(0)
    keys = jax.random.split(key, 9)

    # Deterministic parameter init mimicking PyTorch's U(-1/sqrt(H), 1/sqrt(H)).
    # Fused layouts are the transposed PyTorch weights with gates concatenated
    # along the last dim in PyTorch's i, f, g, o order.
    k = 1.0 / math.sqrt(H)
    wih_f = jax.random.uniform(keys[0], (I, 4 * H), jnp.float32, -k, k)  # W_ih^T fused
    whh_f = jax.random.uniform(keys[1], (H, 4 * H), jnp.float32, -k, k)  # W_hh^T fused
    b_ih = jax.random.uniform(keys[2], (1, 4 * H), jnp.float32, -k, k)
    b_hh = jax.random.uniform(keys[3], (1, 4 * H), jnp.float32, -k, k)
    b_f = b_ih + b_hh
    wl = jax.random.uniform(keys[4], (H, O), jnp.float32, -k, k)         # Linear weight^T
    bl = jax.random.uniform(keys[5], (1, O), jnp.float32, -k, k)

    # forward() samples h0/c0 ~ randn each call; drawn deterministically here.
    h0 = jax.random.normal(keys[6], (1, H), jnp.float32)
    c0 = jax.random.normal(keys[7], (1, H), jnp.float32)

    x = jax.random.normal(keys[8], (T, I), jnp.float32)

    # Pack the four small (1, ·) operands into one lane-dense (8, 128) slab.
    small = jnp.zeros((8, 4 * H), jnp.float32)
    small = small.at[0, :].set(b_f[0])
    small = small.at[1, :O].set(bl[0])
    small = small.at[2, :H].set(h0[0])
    small = small.at[3, :H].set(c0[0])

    out = my_lstm_forward(x, wih_f, whh_f, wl, small)
    out = jax.block_until_ready(out)

    ref = reference_forward(x, wih_f, whh_f, b_f, wl, bl, h0, c0)
    assert out.shape == (T, O)
    # Kernel uses bf16 MXU operands (f32 accumulation), so tolerance vs the pure
    # f32 reference is loosened accordingly; still tight enough to catch any
    # gate-order / math error (output magnitudes are O(0.1-1)).
    assert jnp.allclose(out, ref, rtol=5e-2, atol=5e-2), "mismatch vs JAX reference"

    print("KERNEL_OK")
</pallas_src>

<mosaic_0001>
module attributes {stable_mosaic.version = 11 : i64} {
  func.func @lstm_kernel(%arg0: i32, %arg1: memref<8x16xf32, #tpu.memory_space<vmem>>, %arg2: memref<16x128xf32, #tpu.memory_space<vmem>>, %arg3: memref<32x128xf32, #tpu.memory_space<vmem>>, %arg4: memref<32x8xf32, #tpu.memory_space<vmem>>, %arg5: memref<8x128xf32, #tpu.memory_space<vmem>>, %arg6: memref<8x8xf32, #tpu.memory_space<vmem>>) attributes {dimension_semantics = [#tpu.dimension_semantics<arbitrary>], iteration_bounds = array<i64: 1>, scalar_prefetch = 0 : i64, scratch_operands = 0 : i64, tpu.core_type = #tpu.core_type<tc>, window_params = [{pipeline_mode = #tpu.pipeline_mode<synchronous>, transform_indices = @transform_0, window_bounds = array<i64: 8, 16>}, {pipeline_mode = #tpu.pipeline_mode<synchronous>, transform_indices = @transform_1, window_bounds = array<i64: 16, 128>}, {pipeline_mode = #tpu.pipeline_mode<synchronous>, transform_indices = @transform_2, window_bounds = array<i64: 32, 128>}, {pipeline_mode = #tpu.pipeline_mode<synchronous>, transform_indices = @transform_3, window_bounds = array<i64: 32, 8>}, {pipeline_mode = #tpu.pipeline_mode<synchronous>, transform_indices = @transform_4, window_bounds = array<i64: 8, 128>}, {pipeline_mode = #tpu.pipeline_mode<synchronous>, transform_indices = @transform_5, window_bounds = array<i64: 8, 8>}]} {
    %c0 = arith.constant 0 : index
    %c0_0 = arith.constant 0 : index
    %0 = vector.load %arg5[%c0, %c0_0] : memref<8x128xf32, #tpu.memory_space<vmem>>, vector<1x128xf32>
    %c1 = arith.constant 1 : index
    %c0_1 = arith.constant 0 : index
    %1 = vector.load %arg5[%c1, %c0_1] : memref<8x128xf32, #tpu.memory_space<vmem>>, vector<1x8xf32>
    %c2 = arith.constant 2 : index
    %c0_2 = arith.constant 0 : index
    %2 = vector.load %arg5[%c2, %c0_2] : memref<8x128xf32, #tpu.memory_space<vmem>>, vector<1x32xf32>
    %c3 = arith.constant 3 : index
    %c0_3 = arith.constant 0 : index
    %3 = vector.load %arg5[%c3, %c0_3] : memref<8x128xf32, #tpu.memory_space<vmem>>, vector<1x32xf32>
    %c0_4 = arith.constant 0 : index
    %c0_5 = arith.constant 0 : index
    %4 = vector.load %arg1[%c0_4, %c0_5] : memref<8x16xf32, #tpu.memory_space<vmem>>, vector<8x16xf32>
    %5 = arith.truncf %4 : vector<8x16xf32> to vector<8x16xbf16>
    %c0_6 = arith.constant 0 : index
    %c0_7 = arith.constant 0 : index
    %6 = vector.load %arg2[%c0_6, %c0_7] : memref<16x128xf32, #tpu.memory_space<vmem>>, vector<16x128xf32>
    %7 = arith.truncf %6 : vector<16x128xf32> to vector<16x128xbf16>
    %cst = arith.constant dense<0.000000e+00> : vector<8x128xf32>
    %8 = tpu.matmul %5, %7, %cst {dimension_numbers = #tpu.dot_dimension_numbers<[1], [0], [0], [1], [0, 0, 1, 1], [], []>} : vector<8x16xbf16>, vector<16x128xbf16>, vector<8x128xf32> -> vector<8x128xf32>
    %9 = vector.broadcast %0 : vector<1x128xf32> to vector<8x128xf32>
    %10 = arith.addf %8, %9 : vector<8x128xf32>
    %11 = tpu.iota {dimensions = array<i32: 1>} : vector<1x128xi32>
    %c64_i32 = arith.constant 64 : i32
    %12 = vector.broadcast %c64_i32 : i32 to vector<1x128xi32>
    %13 = arith.cmpi sge, %11, %12 : vector<1x128xi32>
    %c96_i32 = arith.constant 96 : i32
    %14 = vector.broadcast %c96_i32 : i32 to vector<1x128xi32>
    %15 = arith.cmpi slt, %11, %14 : vector<1x128xi32>
    %16 = arith.andi %13, %15 : vector<1x128xi1>
    %cst_8 = arith.constant 1.000000e+00 : f32
    %cst_9 = arith.constant 5.000000e-01 : f32
    %17 = vector.broadcast %cst_8 : f32 to vector<1x128xf32>
    %18 = vector.broadcast %cst_9 : f32 to vector<1x128xf32>
    %19 = arith.select %16, %17, %18 : vector<1x128xi1>, vector<1x128xf32>
    %cst_10 = arith.constant 1.000000e+00 : f32
    %cst_11 = arith.constant 5.000000e-01 : f32
    %20 = vector.broadcast %cst_10 : f32 to vector<1x128xf32>
    %21 = vector.broadcast %cst_11 : f32 to vector<1x128xf32>
    %22 = arith.select %16, %20, %21 : vector<1x128xi1>, vector<1x128xf32>
    %cst_12 = arith.constant 0.000000e+00 : f32
    %cst_13 = arith.constant 5.000000e-01 : f32
    %23 = vector.broadcast %cst_12 : f32 to vector<1x128xf32>
    %24 = vector.broadcast %cst_13 : f32 to vector<1x128xf32>
    %25 = arith.select %16, %23, %24 : vector<1x128xi1>, vector<1x128xf32>
    %c0_14 = arith.constant 0 : index
    %c0_15 = arith.constant 0 : index
    %26 = vector.load %arg3[%c0_14, %c0_15] : memref<32x128xf32, #tpu.memory_space<vmem>>, vector<32x128xf32>
    %27 = arith.truncf %26 : vector<32x128xf32> to vector<32x128xbf16>
    %28 = vector.extract_strided_slice %10 {offsets = [0, 0], sizes = [1, 128], strides = [1, 1]} : vector<8x128xf32> to vector<1x128xf32>
    %29 = arith.truncf %2 : vector<1x32xf32> to vector<1x32xbf16>
    %cst_16 = arith.constant dense<0.000000e+00> : vector<1x128xf32>
    %30 = tpu.matmul %29, %27, %cst_16 {dimension_numbers = #tpu.dot_dimension_numbers<[1], [0], [0], [1], [0, 0, 1, 1], [], []>} : vector<1x32xbf16>, vector<32x128xbf16>, vector<1x128xf32> -> vector<1x128xf32>
    %31 = arith.addf %28, %30 : vector<1x128xf32>
    %32 = arith.mulf %31, %19 : vector<1x128xf32>
    %33 = math.tanh %32 : vector<1x128xf32>
    %34 = arith.mulf %22, %33 : vector<1x128xf32>
    %35 = arith.addf %34, %25 : vector<1x128xf32>
    %36 = vector.extract_strided_slice %35 {offsets = [0, 0], sizes = [1, 32], strides = [1, 1]} : vector<1x128xf32> to vector<1x32xf32>
    %37 = vector.extract_strided_slice %35 {offsets = [0, 32], sizes = [1, 32], strides = [1, 1]} : vector<1x128xf32> to vector<1x32xf32>
    %38 = vector.extract_strided_slice %35 {offsets = [0, 64], sizes = [1, 32], strides = [1, 1]} : vector<1x128xf32> to vector<1x32xf32>
    %39 = vector.extract_strided_slice %35 {offsets = [0, 96], sizes = [1, 32], strides = [1, 1]} : vector<1x128xf32> to vector<1x32xf32>
    %40 = arith.mulf %37, %3 : vector<1x32xf32>
    %41 = arith.mulf %36, %38 : vector<1x32xf32>
    %42 = arith.addf %40, %41 : vector<1x32xf32>
    %43 = math.tanh %42 : vector<1x32xf32>
    %44 = arith.mulf %39, %43 : vector<1x32xf32>
    %45 = vector.extract_strided_slice %10 {offsets = [1, 0], sizes = [1, 128], strides = [1, 1]} : vector<8x128xf32> to vector<1x128xf32>
    %46 = arith.truncf %44 : vector<1x32xf32> to vector<1x32xbf16>
    %cst_17 = arith.constant dense<0.000000e+00> : vector<1x128xf32>
    %47 = tpu.matmul %46, %27, %cst_17 {dimension_numbers = #tpu.dot_dimension_numbers<[1], [0], [0], [1], [0, 0, 1, 1], [], []>} : vector<1x32xbf16>, vector<32x128xbf16>, vector<1x128xf32> -> vector<1x128xf32>
    %48 = arith.addf %45, %47 : vector<1x128xf32>
    %49 = arith.mulf %48, %19 : vector<1x128xf32>
    %50 = math.tanh %49 : vector<1x128xf32>
    %51 = arith.mulf %22, %50 : vector<1x128xf32>
    %52 = arith.addf %51, %25 : vector<1x128xf32>
    %53 = vector.extract_strided_slice %52 {offsets = [0, 0], sizes = [1, 32], strides = [1, 1]} : vector<1x128xf32> to vector<1x32xf32>
    %54 = vector.extract_strided_slice %52 {offsets = [0, 32], sizes = [1, 32], strides = [1, 1]} : vector<1x128xf32> to vector<1x32xf32>
    %55 = vector.extract_strided_slice %52 {offsets = [0, 64], sizes = [1, 32], strides = [1, 1]} : vector<1x128xf32> to vector<1x32xf32>
    %56 = vector.extract_strided_slice %52 {offsets = [0, 96], sizes = [1, 32], strides = [1, 1]} : vector<1x128xf32> to vector<1x32xf32>
    %57 = arith.mulf %54, %42 : vector<1x32xf32>
    %58 = arith.mulf %53, %55 : vector<1x32xf32>
    %59 = arith.addf %57, %58 : vector<1x32xf32>
    %60 = math.tanh %59 : vector<1x32xf32>
    %61 = arith.mulf %56, %60 : vector<1x32xf32>
    %62 = vector.extract_strided_slice %10 {offsets = [2, 0], sizes = [1, 128], strides = [1, 1]} : vector<8x128xf32> to vector<1x128xf32>
    %63 = arith.truncf %61 : vector<1x32xf32> to vector<1x32xbf16>
    %cst_18 = arith.constant dense<0.000000e+00> : vector<1x128xf32>
    %64 = tpu.matmul %63, %27, %cst_18 {dimension_numbers = #tpu.dot_dimension_numbers<[1], [0], [0], [1], [0, 0, 1, 1], [], []>} : vector<1x32xbf16>, vector<32x128xbf16>, vector<1x128xf32> -> vector<1x128xf32>
    %65 = arith.addf %62, %64 : vector<1x128xf32>
    %66 = arith.mulf %65, %19 : vector<1x128xf32>
    %67 = math.tanh %66 : vector<1x128xf32>
    %68 = arith.mulf %22, %67 : vector<1x128xf32>
    %69 = arith.addf %68, %25 : vector<1x128xf32>
    %70 = vector.extract_strided_slice %69 {offsets = [0, 0], sizes = [1, 32], strides = [1, 1]} : vector<1x128xf32> to vector<1x32xf32>
    %71 = vector.extract_strided_slice %69 {offsets = [0, 32], sizes = [1, 32], strides = [1, 1]} : vector<1x128xf32> to vector<1x32xf32>
    %72 = vector.extract_strided_slice %69 {offsets = [0, 64], sizes = [1, 32], strides = [1, 1]} : vector<1x128xf32> to vector<1x32xf32>
    %73 = vector.extract_strided_slice %69 {offsets = [0, 96], sizes = [1, 32], strides = [1, 1]} : vector<1x128xf32> to vector<1x32xf32>
    %74 = arith.mulf %71, %59 : vector<1x32xf32>
    %75 = arith.mulf %70, %72 : vector<1x32xf32>
    %76 = arith.addf %74, %75 : vector<1x32xf32>
    %77 = math.tanh %76 : vector<1x32xf32>
    %78 = arith.mulf %73, %77 : vector<1x32xf32>
    %79 = vector.extract_strided_slice %10 {offsets = [3, 0], sizes = [1, 128], strides = [1, 1]} : vector<8x128xf32> to vector<1x128xf32>
    %80 = arith.truncf %78 : vector<1x32xf32> to vector<1x32xbf16>
    %cst_19 = arith.constant dense<0.000000e+00> : vector<1x128xf32>
    %81 = tpu.matmul %80, %27, %cst_19 {dimension_numbers = #tpu.dot_dimension_numbers<[1], [0], [0], [1], [0, 0, 1, 1], [], []>} : vector<1x32xbf16>, vector<32x128xbf16>, vector<1x128xf32> -> vector<1x128xf32>
    %82 = arith.addf %79, %81 : vector<1x128xf32>
    %83 = arith.mulf %82, %19 : vector<1x128xf32>
    %84 = math.tanh %83 : vector<1x128xf32>
    %85 = arith.mulf %22, %84 : vector<1x128xf32>
    %86 = arith.addf %85, %25 : vector<1x128xf32>
    %87 = vector.extract_strided_slice %86 {offsets = [0, 0], sizes = [1, 32], strides = [1, 1]} : vector<1x128xf32> to vector<1x32xf32>
    %88 = vector.extract_strided_slice %86 {offsets = [0, 32], sizes = [1, 32], strides = [1, 1]} : vector<1x128xf32> to vector<1x32xf32>
    %89 = vector.extract_strided_slice %86 {offsets = [0, 64], sizes = [1, 32], strides = [1, 1]} : vector<1x128xf32> to vector<1x32xf32>
    %90 = vector.extract_strided_slice %86 {offsets = [0, 96], sizes = [1, 32], strides = [1, 1]} : vector<1x128xf32> to vector<1x32xf32>
    %91 = arith.mulf %88, %76 : vector<1x32xf32>
    %92 = arith.mulf %87, %89 : vector<1x32xf32>
    %93 = arith.addf %91, %92 : vector<1x32xf32>
    %94 = math.tanh %93 : vector<1x32xf32>
    %95 = arith.mulf %90, %94 : vector<1x32xf32>
    %96 = vector.extract_strided_slice %10 {offsets = [4, 0], sizes = [1, 128], strides = [1, 1]} : vector<8x128xf32> to vector<1x128xf32>
    %97 = arith.truncf %95 : vector<1x32xf32> to vector<1x32xbf16>
    %cst_20 = arith.constant dense<0.000000e+00> : vector<1x128xf32>
    %98 = tpu.matmul %97, %27, %cst_20 {dimension_numbers = #tpu.dot_dimension_numbers<[1], [0], [0], [1], [0, 0, 1, 1], [], []>} : vector<1x32xbf16>, vector<32x128xbf16>, vector<1x128xf32> -> vector<1x128xf32>
    %99 = arith.addf %96, %98 : vector<1x128xf32>
    %100 = arith.mulf %99, %19 : vector<1x128xf32>
    %101 = math.tanh %100 : vector<1x128xf32>
    %102 = arith.mulf %22, %101 : vector<1x128xf32>
    %103 = arith.addf %102, %25 : vector<1x128xf32>
    %104 = vector.extract_strided_slice %103 {offsets = [0, 0], sizes = [1, 32], strides = [1, 1]} : vector<1x128xf32> to vector<1x32xf32>
    %105 = vector.extract_strided_slice %103 {offsets = [0, 32], sizes = [1, 32], strides = [1, 1]} : vector<1x128xf32> to vector<1x32xf32>
    %106 = vector.extract_strided_slice %103 {offsets = [0, 64], sizes = [1, 32], strides = [1, 1]} : vector<1x128xf32> to vector<1x32xf32>
    %107 = vector.extract_strided_slice %103 {offsets = [0, 96], sizes = [1, 32], strides = [1, 1]} : vector<1x128xf32> to vector<1x32xf32>
    %108 = arith.mulf %105, %93 : vector<1x32xf32>
    %109 = arith.mulf %104, %106 : vector<1x32xf32>
    %110 = arith.addf %108, %109 : vector<1x32xf32>
    %111 = math.tanh %110 : vector<1x32xf32>
    %112 = arith.mulf %107, %111 : vector<1x32xf32>
    %113 = vector.extract_strided_slice %10 {offsets = [5, 0], sizes = [1, 128], strides = [1, 1]} : vector<8x128xf32> to vector<1x128xf32>
    %114 = arith.truncf %112 : vector<1x32xf32> to vector<1x32xbf16>
    %cst_21 = arith.constant dense<0.000000e+00> : vector<1x128xf32>
    %115 = tpu.matmul %114, %27, %cst_21 {dimension_numbers = #tpu.dot_dimension_numbers<[1], [0], [0], [1], [0, 0, 1, 1], [], []>} : vector<1x32xbf16>, vector<32x128xbf16>, vector<1x128xf32> -> vector<1x128xf32>
    %116 = arith.addf %113, %115 : vector<1x128xf32>
    %117 = arith.mulf %116, %19 : vector<1x128xf32>
    %118 = math.tanh %117 : vector<1x128xf32>
    %119 = arith.mulf %22, %118 : vector<1x128xf32>
    %120 = arith.addf %119, %25 : vector<1x128xf32>
    %121 = vector.extract_strided_slice %120 {offsets = [0, 0], sizes = [1, 32], strides = [1, 1]} : vector<1x128xf32> to vector<1x32xf32>
    %122 = vector.extract_strided_slice %120 {offsets = [0, 32], sizes = [1, 32], strides = [1, 1]} : vector<1x128xf32> to vector<1x32xf32>
    %123 = vector.extract_strided_slice %120 {offsets = [0, 64], sizes = [1, 32], strides = [1, 1]} : vector<1x128xf32> to vector<1x32xf32>
    %124 = vector.extract_strided_slice %120 {offsets = [0, 96], sizes = [1, 32], strides = [1, 1]} : vector<1x128xf32> to vector<1x32xf32>
    %125 = arith.mulf %122, %110 : vector<1x32xf32>
    %126 = arith.mulf %121, %123 : vector<1x32xf32>
    %127 = arith.addf %125, %126 : vector<1x32xf32>
    %128 = math.tanh %127 : vector<1x32xf32>
    %129 = arith.mulf %124, %128 : vector<1x32xf32>
    %130 = vector.extract_strided_slice %10 {offsets = [6, 0], sizes = [1, 128], strides = [1, 1]} : vector<8x128xf32> to vector<1x128xf32>
    %131 = arith.truncf %129 : vector<1x32xf32> to vector<1x32xbf16>
    %cst_22 = arith.constant dense<0.000000e+00> : vector<1x128xf32>
    %132 = tpu.matmul %131, %27, %cst_22 {dimension_numbers = #tpu.dot_dimension_numbers<[1], [0], [0], [1], [0, 0, 1, 1], [], []>} : vector<1x32xbf16>, vector<32x128xbf16>, vector<1x128xf32> -> vector<1x128xf32>
    %133 = arith.addf %130, %132 : vector<1x128xf32>
    %134 = arith.mulf %133, %19 : vector<1x128xf32>
    %135 = math.tanh %134 : vector<1x128xf32>
    %136 = arith.mulf %22, %135 : vector<1x128xf32>
    %137 = arith.addf %136, %25 : vector<1x128xf32>
    %138 = vector.extract_strided_slice %137 {offsets = [0, 0], sizes = [1, 32], strides = [1, 1]} : vector<1x128xf32> to vector<1x32xf32>
    %139 = vector.extract_strided_slice %137 {offsets = [0, 32], sizes = [1, 32], strides = [1, 1]} : vector<1x128xf32> to vector<1x32xf32>
    %140 = vector.extract_strided_slice %137 {offsets = [0, 64], sizes = [1, 32], strides = [1, 1]} : vector<1x128xf32> to vector<1x32xf32>
    %141 = vector.extract_strided_slice %137 {offsets = [0, 96], sizes = [1, 32], strides = [1, 1]} : vector<1x128xf32> to vector<1x32xf32>
    %142 = arith.mulf %139, %127 : vector<1x32xf32>
    %143 = arith.mulf %138, %140 : vector<1x32xf32>
    %144 = arith.addf %142, %143 : vector<1x32xf32>
    %145 = math.tanh %144 : vector<1x32xf32>
    %146 = arith.mulf %141, %145 : vector<1x32xf32>
    %147 = vector.extract_strided_slice %10 {offsets = [7, 0], sizes = [1, 128], strides = [1, 1]} : vector<8x128xf32> to vector<1x128xf32>
    %148 = arith.truncf %146 : vector<1x32xf32> to vector<1x32xbf16>
    %cst_23 = arith.constant dense<0.000000e+00> : vector<1x128xf32>
    %149 = tpu.matmul %148, %27, %cst_23 {dimension_numbers = #tpu.dot_dimension_numbers<[1], [0], [0], [1], [0, 0, 1, 1], [], []>} : vector<1x32xbf16>, vector<32x128xbf16>, vector<1x128xf32> -> vector<1x128xf32>
    %150 = arith.addf %147, %149 : vector<1x128xf32>
    %151 = arith.mulf %150, %19 : vector<1x128xf32>
    %152 = math.tanh %151 : vector<1x128xf32>
    %153 = arith.mulf %22, %152 : vector<1x128xf32>
    %154 = arith.addf %153, %25 : vector<1x128xf32>
    %155 = vector.extract_strided_slice %154 {offsets = [0, 0], sizes = [1, 32], strides = [1, 1]} : vector<1x128xf32> to vector<1x32xf32>
    %156 = vector.extract_strided_slice %154 {offsets = [0, 32], sizes = [1, 32], strides = [1, 1]} : vector<1x128xf32> to vector<1x32xf32>
    %157 = vector.extract_strided_slice %154 {offsets = [0, 64], sizes = [1, 32], strides = [1, 1]} : vector<1x128xf32> to vector<1x32xf32>
    %158 = vector.extract_strided_slice %154 {offsets = [0, 96], sizes = [1, 32], strides = [1, 1]} : vector<1x128xf32> to vector<1x32xf32>
    %159 = arith.mulf %156, %144 : vector<1x32xf32>
    %160 = arith.mulf %155, %157 : vector<1x32xf32>
    %161 = arith.addf %159, %160 : vector<1x32xf32>
    %162 = math.tanh %161 : vector<1x32xf32>
    %163 = arith.mulf %158, %162 : vector<1x32xf32>
    %164 = tpu.concatenate %44, %61, %78, %95, %112, %129, %146, %163 in 0 : vector<1x32xf32>, vector<1x32xf32>, vector<1x32xf32>, vector<1x32xf32>, vector<1x32xf32>, vector<1x32xf32>, vector<1x32xf32>, vector<1x32xf32> -> vector<8x32xf32>
    %165 = arith.truncf %164 : vector<8x32xf32> to vector<8x32xbf16>
    %c0_24 = arith.constant 0 : index
    %c0_25 = arith.constant 0 : index
    %166 = vector.load %arg4[%c0_24, %c0_25] : memref<32x8xf32, #tpu.memory_space<vmem>>, vector<32x8xf32>
    %167 = arith.truncf %166 : vector<32x8xf32> to vector<32x8xbf16>
    %cst_26 = arith.constant dense<0.000000e+00> : vector<8x8xf32>
    %168 = tpu.matmul %165, %167, %cst_26 {dimension_numbers = #tpu.dot_dimension_numbers<[1], [0], [0], [1], [0, 0, 1, 1], [], []>} : vector<8x32xbf16>, vector<32x8xbf16>, vector<8x8xf32> -> vector<8x8xf32>
    %169 = vector.broadcast %1 : vector<1x8xf32> to vector<8x8xf32>
    %170 = arith.addf %168, %169 : vector<8x8xf32>
    %c0_27 = arith.constant 0 : index
    %c0_28 = arith.constant 0 : index
    %171 = vector.load %arg6[%c0_27, %c0_28] : memref<8x8xf32, #tpu.memory_space<vmem>>, vector<8x8xf32>
    tpu.vector_store %arg6[%c0_27, %c0_28], %170 {strides = array<i32>} : memref<8x8xf32, #tpu.memory_space<vmem>>, vector<8x8xf32>,
    return
  }
  func.func @transform_0(%arg0: i32) -> (i32, i32) {
    %c0_i32 = arith.constant 0 : i32
    %c0_i32_0 = arith.constant 0 : i32
    %c0_i32_1 = arith.constant 0 : i32
    return %c0_i32, %c0_i32_0 : i32, i32
  }
  func.func @transform_1(%arg0: i32) -> (i32, i32) {
    %c0_i32 = arith.constant 0 : i32
    %c0_i32_0 = arith.constant 0 : i32
    %c0_i32_1 = arith.constant 0 : i32
    return %c0_i32, %c0_i32_0 : i32, i32
  }
  func.func @transform_2(%arg0: i32) -> (i32, i32) {
    %c0_i32 = arith.constant 0 : i32
    %c0_i32_0 = arith.constant 0 : i32
    %c0_i32_1 = arith.constant 0 : i32
    return %c0_i32, %c0_i32_0 : i32, i32
  }
  func.func @transform_3(%arg0: i32) -> (i32, i32) {
    %c0_i32 = arith.constant 0 : i32
    %c0_i32_0 = arith.constant 0 : i32
    %c0_i32_1 = arith.constant 0 : i32
    return %c0_i32, %c0_i32_0 : i32, i32
  }
  func.func @transform_4(%arg0: i32) -> (i32, i32) {
    %c0_i32 = arith.constant 0 : i32
    %c0_i32_0 = arith.constant 0 : i32
    %c0_i32_1 = arith.constant 0 : i32
    return %c0_i32, %c0_i32_0 : i32, i32
  }
  func.func @transform_5(%arg0: i32) -> (i32, i32) {
    %c0_i32 = arith.constant 0 : i32
    %c0_i32_0 = arith.constant 0 : i32
    %c0_i32_1 = arith.constant 0 : i32
    return %c0_i32, %c0_i32_0 : i32, i32
  }
}

</mosaic_0001>

<bundles_post_ra>
// kernel: tpu_custom_call.1
= control target key start
LH: loop header
LB: loop body
LE: loop exit
PB: predicated region body
PF: predicated region fallthrough
CT: control target
= control target key end

     0   :  { %10 = vsyncpa [#allocation3], 0  ;;  %s1261_s0 = inlined_call_operand.vmem [shape: f32[8,16], index: 0, kind: input, shape index: {}]   ;;  %s1262_s1 = inlined_call_operand.hbm [shape: f32[16,128], index: 1, kind: input, shape index: {}]   ;;  %s1263_s2 = inlined_call_operand.vmem [shape: f32[32,128], index: 2, kind: input, shape index: {}]   ;;  %s1264_s3 = inlined_call_operand.vmem [shape: f32[32,8], index: 3, kind: input, shape index: {}]   ;;  %s1265_s4 = inlined_call_operand.hbm [shape: f32[8,128], index: 4, kind: input, shape index: {}]   ;;  %s1266_s5 = inlined_call_operand.hbm [shape: f32[8,8], index: 5, kind: output, shape index: {}]  }
   0x1   :  { %11 = vsyncpa [#allocation6], 0 }
   0x2   :  { %12 = vsyncpa [#allocation4], 0  ;;  %s1041_s18 = smov [#allocation2]  }
   0x3   :  { %s20_s19 = sshll.u32 %s1041_s18, 4  ;;  %s21_s19 = int_to_ptr.vmem [resolvable:$true] %s20_s19 }
   0x4   :  { %s983_s20 = scalar_lea.vmem %s21_s19, 256  ;;  %p988_p1 = scmp.lt.s32.totalorder %s21_s19, %s21_s19 }
   0x5   :  { %p984_p0 = scmp.ne.s32.totalorder %s21_s19, %s983_s20  ;;  %p989_p2 = scmp.lt.s32.totalorder %s983_s20, %s983_s20 }
   0x7   :  { %p990_p3 = por %p989_p2, %p988_p1 }
   0x9   :  { %p991_p4 = pnand %p990_p3, %p984_p0 }
   0xb   :  { %994 = shalt.err (!%p991_p4)
}
   0xc   :  { %s1042_s21 = smov 128   ;;  %s1043_s22 = smov 8  }
   0xd   :  { %26 = dma.hbm_to_vmem [thread:$0]  %s1262_s1, 256, %s21_s19, [#allocation3], %s1042_s21, %s1042_s21, %s1043_s22  }
   0xe   :  { %s1044_s25 = smov [#allocation5]  }
   0xf   :  { %s37_s26 = sshll.u32 %s1044_s25, 4  ;;  %s38_s26 = int_to_ptr.vmem [resolvable:$true] %s37_s26 }
  0x10   :  { %s1003_s27 = scalar_lea.vmem %s38_s26, 128  ;;  %p1008_p6 = scmp.lt.s32.totalorder %s38_s26, %s38_s26 }
  0x11   :  { %p1004_p5 = scmp.ne.s32.totalorder %s38_s26, %s1003_s27  ;;  %p1009_p7 = scmp.lt.s32.totalorder %s1003_s27, %s1003_s27 }
  0x13   :  { %p1010_p8 = por %p1009_p7, %p1008_p6 }
  0x15   :  { %p1011_p9 = pnand %p1010_p8, %p1004_p5 }
  0x17   :  { %1014 = shalt.err (!%p1011_p9)
}
  0x18   :  { %40 = dma.hbm_to_vmem [thread:$0]  %s1265_s4, 128, %s38_s26, [#allocation6]  }
  0x19   :  { %1035 = dma.done.wait [#allocation3], 256  }
  0x1a   :  { %1036 = vsyncadd [#allocation3], 4294967040 }
  0x1b   :  { %1037 = dma.done.wait [#allocation6], 128  }
  0x1c   :  { %1038 = vsyncadd [#allocation6], 4294967168  ;;  %v1045_v0 = vmov 0.0   ;;  %vm1046_vm0 = vmmov 0   ;;  %v54_v1 = vld [vmem:[#allocation2] sm:$0xff]  ;;  %v55_v2 = vld [vmem:[#allocation2 + $0x8] sm:$0xff]  ;;  %v105_v14 = vlaneseq }
  0x1d   :  { %855 = vmatprep.subr.bf16.mxu0 %v1045_v0  ;;  %861 = vmatprep.subr.bf16.mxu1 %v1045_v0  ;;  %v114_v3 = vld [vmem:[%s1263_s2 + $0x10] sm:$0xff]  ;;  %v56_v4 = vpack.c.bf16 %v55_v2, %v54_v1  ;;  %v115_v5 = vld [vmem:[%s1263_s2 + $0x18] sm:$0xff]  ;;  %v52_v6 = vld [vmem:[%s1261_s0] sm:$0xff]  ;;  %vm61_vm1 = vcmask 130048   ;;  %vm119_vm2 = vcmask 261120   ;;  %v1047_v21 = vmov 0.5  }
  0x1e   :  { %857 = vmatprep.mubr.msk.bf16.mxu0 %vm1046_vm0, %v1045_v0  ;;  %865 = vmatprep.mubr.msk.bf16.mxu1 %vm1046_vm0, %v1045_v0  ;;  %v112_v7 = vld [vmem:[%s1263_s2] sm:$0xff]  ;;  %v1105_v8 = vpack.c.bf16 %v115_v5, %v114_v3  ;;  %v53_v9 = vpack.c.bf16 %v52_v6, %v52_v6  ;;  %v113_v10 = vld [vmem:[%s1263_s2 + $0x8] sm:$0xff]  ;;  %v50_v12 = vld [vmem:[#allocation5 + $0x2] sm:$0x1]  ;;  %v106_v15 = vand.u32 127, %v105_v14  ;;  %s1048_s0 = smov 64  }
  0x1f   :  { %856 = vmatpush3.bf16.msra.mxu0 %v56_v4  ;;  %v1111_v11 = vpack.c.bf16 %v113_v10, %v112_v7  ;;  %v118_v13 = vpack.c.bf16 %v50_v12, %v50_v12  ;;  %v814_v16 = vld [vmem:[#allocation5] ss:$0 sm:$0xff]  ;;  %v51_v34 = vld [vmem:[#allocation5 + $0x3] sm:$0x1]  ;;  %s1049_s2 = smov 32   ;;  %vm725_vm6 = vcmask 1040384  }
  0x20   :  { %862 = vmatpush3.bf16.msra.mxu1 %v1105_v8  ;;  %869 = vmatprep.subr.bf16.mxu0 %v1045_v0  ;;  %vm107_vm3 = vcmp.ge.s32.totalorder %v106_v15, 64  ;;  %vm108_vm4 = vcmp.lt.s32.totalorder %v106_v15, 96  ;;  %vm727_vm7 = vcmask 1041408   ;;  %vm729_vm8 = vcmask 1042432  }
  0x21   :  { %863 = vmatprep.subr.bf16.mxu1 %v1045_v0  ;;  %vm109_vm5 = vmand %vm107_vm3, %vm108_vm4  ;;  %vm731_vm9 = vcmask 1043456   ;;  %vm733_vm10 = vcmask 1044480   ;;  %vm735_vm11 = vcmask 1045504   ;;  %vm737_vm12 = vcmask 1046528  }
  0x22   :  { %858 = vmatmul.mubr.msk.bf16.vlgmr.msra.gmra.mxu0 %vm61_vm1, %v53_v9  ;;  %v1132_v22 = vsel %vm109_vm5, 1.0, %v1047_v21  ;;  %v1136_v31 = vsel %vm109_vm5, 0.0, %v1047_v21  ;;  %vm796_vm13 = vcmask 64512  }
  0x23   :  { %870 = vmatpush3.bf16.msra.mxu0 %v1105_v8  ;;  %873 = vmatprep.mubr.msk.bf16.mxu0 %vm1046_vm0, %v1045_v0 }
  0x24   :  { %864 = vmatpush3.bf16.msra.mxu1 %v1111_v11  ;;  %871 = vmatprep.subr.bf16.mxu0 %v1045_v0 }
  0x25   :  { %877 = vmatprep.subr.bf16.mxu1 %v1045_v0 }
  0x27   :  { %866 = vmatmul.mubr.msk.bf16.vlgmr.msra.gmra.mxu1 %vm119_vm2, %v118_v13  ;;  %872 = vmatpush3.bf16.msra.mxu0 %v1111_v11 }
  0x28   :  { %878 = vmatpush3.bf16.msra.mxu1 %v1105_v8  ;;  %881 = vmatprep.mubr.msk.bf16.mxu1 %vm1046_vm0, %v1045_v0 }
  0x29   :  { %879 = vmatprep.subr.bf16.mxu1 %v1045_v0  ;;  %885 = vmatprep.subr.bf16.mxu0 %v1045_v0 }
  0x2c   :  { %880 = vmatpush3.bf16.msra.mxu1 %v1111_v11 }
  0x2d   :  { %893 = vmatprep.subr.bf16.mxu1 %v1045_v0 }
  0xe2   :  { %v99_v17 = vpop.f32.mrf.mxu0 }
  0xe3   :  { %v1130_v18 = vadd.f32 %v814_v16, %v99_v17 }
  0xe4   :  { %v859_v19 = vpop.f32.mrf.mxu0 }
  0xe6   :  { %v102_v20 = vpop.f32.mrf.mxu0 }
  0xe7   :  { %v157_v23 = vpop.f32.mrf.mxu1 }
  0xe8   :  { %v163_v24 = vadd.f32 %v157_v23, %v1130_v18  ;;  %v860_v25 = vpop.f32.mrf.mxu0 }
  0xe9   :  { %v867_v26 = vpop.f32.mrf.mxu1 }
  0xea   :  { %v164_v27 = vmul.f32 %v163_v24, %v1132_v22 }
  0xeb   :  { %v160_v28 = vpop.f32.mrf.mxu1 }
  0xec   :  { %943 = vtanh.f32 %v164_v27 }
  0xed   :  { %v868_v29 = vpop.f32.mrf.mxu1 }
  0xf9   :  { %v944_v30 = vpop.eup %943 }
  0xfa   :  { %v166_v32 = vmul.f32 %v944_v30, %v1132_v22 }
  0xfc   :  { %v167_v33 = vadd.f32 %v166_v32, %v1136_v31 }
  0xfe   :  { %174 = vrot.lane.b32.xlu0 %v167_v33, %s1048_s0 }
 0x102   :  { %169 = vrot.lane.b32.xlu0 %v51_v34, %s1049_s2 }
 0x170   :  { %v175_v35 = vpop.permute.xlu0 %174 }
 0x171   :  { %v177_v36 = vmul.f32 %v175_v35, %v167_v33 }
 0x173   :  { %179 = vrot.lane.b32.xlu1 %v177_v36, %s1049_s2 }
 0x174   :  { %v170_v37 = vpop.permute.xlu0 %169 }
 0x175   :  { %v172_v38 = vmul.f32 %v170_v37, %v167_v33 }
 0x1e5   :  { %v180_v39 = vpop.permute.xlu1 %179 }
 0x1e6   :  { %v182_v40 = vadd.f32 %v180_v39, %v172_v38 }
 0x1e8   :  { %945 = vtanh.f32 %v182_v40  ;;  %v245_v58 = vrot.slane %v182_v40, 7 }
 0x1f5   :  { %v946_v41 = vpop.eup %945 }
 0x1f6   :  { %185 = vrot.lane.b32.xlu1 %v946_v41, %s1048_s0 }
 0x268   :  { %v186_v42 = vpop.permute.xlu1 %185 }
 0x269   :  { %v1144_v43 = vmul.f32 %v186_v42, %v167_v33 }
 0x26b   :  { %v189_v44 = vpack.c.bf16 %v1144_v43, %v1144_v43 }
 0x26d   :  { %191 = vrot.lane.b32.xlu0 %v189_v44, %s1049_s2 }
 0x2df   :  { %v192_v45 = vpop.permute.xlu0 %191 }
 0x2e0   :  { %874 = vmatmul.mubr.msk.bf16.vlgmr.msra.gmra.mxu0 %vm119_vm2, %v192_v45 }
 0x2e1   :  { %886 = vmatpush3.bf16.msra.mxu0 %v1105_v8  ;;  %889 = vmatprep.mubr.msk.bf16.mxu0 %vm1046_vm0, %v1045_v0 }
 0x2e2   :  { %887 = vmatprep.subr.bf16.mxu0 %v1045_v0 }
 0x2e5   :  { %888 = vmatpush3.bf16.msra.mxu0 %v1111_v11 }
 0x2e6   :  { %901 = vmatprep.subr.bf16.mxu0 %v1045_v0 }
 0x3a0   :  { %v230_v46 = vpop.f32.mrf.mxu0 }
 0x3a1   :  { %v237_v47 = vrot.slane %v230_v46, 7 }
 0x3a2   :  { %v875_v48 = vpop.f32.mrf.mxu0 }
 0x3a3   :  { %v239_v49 = vadd.f32 %v237_v47, %v1130_v18 }
 0x3a4   :  { %v233_v50 = vpop.f32.mrf.mxu0 }
 0x3a5   :  { %v240_v51 = vmul.f32 %v239_v49, %v1132_v22 }
 0x3a6   :  { %v876_v52 = vpop.f32.mrf.mxu0 }
 0x3a7   :  { %947 = vtanh.f32 %v240_v51 }
 0x3b4   :  { %v948_v53 = vpop.eup %947 }
 0x3b5   :  { %v242_v54 = vmul.f32 %v948_v53, %v1132_v22 }
 0x3b7   :  { %v243_v55 = vadd.f32 %v242_v54, %v1136_v31 }
 0x3b9   :  { %249 = vrot.lane.b32.xlu1 %v243_v55, %s1048_s0  ;;  %v247_v59 = vmul.f32 %v245_v58, %v243_v55 }
 0x42b   :  { %v250_v56 = vpop.permute.xlu1 %249 }
 0x42c   :  { %v252_v57 = vmul.f32 %v250_v56, %v243_v55 }
 0x42e   :  { %254 = vrot.lane.b32.xlu0 %v252_v57, %s1049_s2 }
 0x4a0   :  { %v255_v60 = vpop.permute.xlu0 %254 }
 0x4a1   :  { %v257_v61 = vadd.f32 %v255_v60, %v247_v59 }
 0x4a3   :  { %949 = vtanh.f32 %v257_v61  ;;  %v322_v20 = vrot.slane %v257_v61, 7 }
 0x4b0   :  { %v950_v62 = vpop.eup %949 }
 0x4b1   :  { %260 = vrot.lane.b32.xlu1 %v950_v62, %s1048_s0 }
 0x523   :  { %v261_v63 = vpop.permute.xlu1 %260 }
 0x524   :  { %v263_v1 = vmul.f32 %v261_v63, %v243_v55 }
 0x526   :  { %v264_v2 = vpack.c.bf16 %v263_v1, %v263_v1  ;;  %v726_v28 = vsel %vm725_vm6, %v1144_v43, %v263_v1 }
 0x528   :  { %v266_v3 = vshrl.u32 %v264_v2, 16 }
 0x52a   :  { %268 = vrot.lane.b32.xlu0 %v266_v3, %s1049_s2 }
 0x59c   :  { %v269_v4 = vpop.permute.xlu0 %268 }
 0x59d   :  { %882 = vmatmul.mubr.msk.bf16.vlgmr.msra.gmra.mxu1 %vm119_vm2, %v269_v4 }
 0x59e   :  { %894 = vmatpush3.bf16.msra.mxu1 %v1105_v8  ;;  %897 = vmatprep.mubr.msk.bf16.mxu1 %vm1046_vm0, %v1045_v0 }
 0x59f   :  { %895 = vmatprep.subr.bf16.mxu1 %v1045_v0 }
 0x5a2   :  { %896 = vmatpush3.bf16.msra.mxu1 %v1111_v11 }
 0x5a3   :  { %909 = vmatprep.subr.bf16.mxu1 %v1045_v0 }
 0x65d   :  { %v307_v5 = vpop.f32.mrf.mxu1 }
 0x65e   :  { %v314_v6 = vrot.slane %v307_v5, 6 }
 0x65f   :  { %v883_v7 = vpop.f32.mrf.mxu1 }
 0x660   :  { %v316_v9 = vadd.f32 %v314_v6, %v1130_v18 }
 0x661   :  { %v310_v10 = vpop.f32.mrf.mxu1 }
 0x662   :  { %v317_v12 = vmul.f32 %v316_v9, %v1132_v22 }
 0x663   :  { %v884_v13 = vpop.f32.mrf.mxu1 }
 0x664   :  { %951 = vtanh.f32 %v317_v12 }
 0x671   :  { %v952_v14 = vpop.eup %951 }
 0x672   :  { %v319_v15 = vmul.f32 %v952_v14, %v1132_v22 }
 0x674   :  { %v320_v16 = vadd.f32 %v319_v15, %v1136_v31 }
 0x676   :  { %326 = vrot.lane.b32.xlu1 %v320_v16, %s1048_s0  ;;  %v324_v21 = vmul.f32 %v322_v20, %v320_v16 }
 0x6e8   :  { %v327_v17 = vpop.permute.xlu1 %326 }
 0x6e9   :  { %v329_v19 = vmul.f32 %v327_v17, %v320_v16 }
 0x6eb   :  { %331 = vrot.lane.b32.xlu0 %v329_v19, %s1049_s2 }
 0x75d   :  { %v332_v23 = vpop.permute.xlu0 %331 }
 0x75e   :  { %v334_v24 = vadd.f32 %v332_v23, %v324_v21 }
 0x760   :  { %953 = vtanh.f32 %v334_v24  ;;  %v398_v46 = vrot.slane %v334_v24, 7 }
 0x76d   :  { %v954_v25 = vpop.eup %953 }
 0x76e   :  { %337 = vrot.lane.b32.xlu1 %v954_v25, %s1048_s0 }
 0x7e0   :  { %v338_v26 = vpop.permute.xlu1 %337 }
 0x7e1   :  { %v340_v27 = vmul.f32 %v338_v26, %v320_v16 }
 0x7e3   :  { %v341_v29 = vpack.c.bf16 %v340_v27, %v340_v27  ;;  %v728_v30 = vsel %vm727_vm7, %v726_v28, %v340_v27 }
 0x7e5   :  { %v343_v32 = vrot.slane %v341_v29, 1 }
 0x7e7   :  { %344 = vrot.lane.b32.xlu0 %v343_v32, %s1049_s2 }
 0x859   :  { %v345_v33 = vpop.permute.xlu0 %344 }
 0x85a   :  { %890 = vmatmul.mubr.msk.bf16.vlgmr.msra.gmra.mxu0 %vm119_vm2, %v345_v33 }
 0x85b   :  { %902 = vmatpush3.bf16.msra.mxu0 %v1105_v8  ;;  %905 = vmatprep.mubr.msk.bf16.mxu0 %vm1046_vm0, %v1045_v0 }
 0x85c   :  { %903 = vmatprep.subr.bf16.mxu0 %v1045_v0 }
 0x85f   :  { %904 = vmatpush3.bf16.msra.mxu0 %v1111_v11 }
 0x860   :  { %917 = vmatprep.subr.bf16.mxu0 %v1045_v0 }
 0x91a   :  { %v383_v34 = vpop.f32.mrf.mxu0 }
 0x91b   :  { %v390_v35 = vrot.slane %v383_v34, 5 }
 0x91c   :  { %v891_v36 = vpop.f32.mrf.mxu0 }
 0x91d   :  { %v392_v37 = vadd.f32 %v390_v35, %v1130_v18 }
 0x91e   :  { %v386_v38 = vpop.f32.mrf.mxu0 }
 0x91f   :  { %v393_v39 = vmul.f32 %v392_v37, %v1132_v22 }
 0x920   :  { %v892_v40 = vpop.f32.mrf.mxu0 }
 0x921   :  { %955 = vtanh.f32 %v393_v39 }
 0x92e   :  { %v956_v41 = vpop.eup %955 }
 0x92f   :  { %v395_v42 = vmul.f32 %v956_v41, %v1132_v22 }
 0x931   :  { %v396_v43 = vadd.f32 %v395_v42, %v1136_v31 }
 0x933   :  { %402 = vrot.lane.b32.xlu1 %v396_v43, %s1048_s0  ;;  %v400_v47 = vmul.f32 %v398_v46, %v396_v43 }
 0x9a5   :  { %v403_v44 = vpop.permute.xlu1 %402 }
 0x9a6   :  { %v405_v45 = vmul.f32 %v403_v44, %v396_v43 }
 0x9a8   :  { %407 = vrot.lane.b32.xlu0 %v405_v45, %s1049_s2 }
 0xa1a   :  { %v408_v48 = vpop.permute.xlu0 %407 }
 0xa1b   :  { %v410_v49 = vadd.f32 %v408_v48, %v400_v47 }
 0xa1d   :  { %957 = vtanh.f32 %v410_v49  ;;  %v476_v7 = vrot.slane %v410_v49, 7 }
 0xa2a   :  { %v958_v50 = vpop.eup %957 }
 0xa2b   :  { %413 = vrot.lane.b32.xlu1 %v958_v50, %s1048_s0 }
 0xa9d   :  { %v414_v51 = vpop.permute.xlu1 %413 }
 0xa9e   :  { %v416_v52 = vmul.f32 %v414_v51, %v396_v43 }
 0xaa0   :  { %v417_v53 = vpack.c.bf16 %v416_v52, %v416_v52  ;;  %v730_v54 = vsel %vm729_vm8, %v728_v30, %v416_v52 }
 0xaa2   :  { %v419_v55 = vshrl.u32 %v417_v53, 16 }
 0xaa4   :  { %v421_v56 = vrot.slane %v419_v55, 1 }
 0xaa6   :  { %422 = vrot.lane.b32.xlu0 %v421_v56, %s1049_s2 }
 0xb18   :  { %v423_v57 = vpop.permute.xlu0 %422 }
 0xb19   :  { %898 = vmatmul.mubr.msk.bf16.vlgmr.msra.gmra.mxu1 %vm119_vm2, %v423_v57 }
 0xb1a   :  { %910 = vmatpush3.bf16.msra.mxu1 %v1105_v8  ;;  %913 = vmatprep.mubr.msk.bf16.mxu1 %vm1046_vm0, %v1045_v0 }
 0xb1b   :  { %911 = vmatprep.subr.bf16.mxu1 %v1045_v0 }
 0xb1e   :  { %912 = vmatpush3.bf16.msra.mxu1 %v1111_v11 }
 0xb1f   :  { %925 = vmatprep.subr.bf16.mxu1 %v1045_v0 }
 0xbd9   :  { %v461_v58 = vpop.f32.mrf.mxu1 }
 0xbda   :  { %v468_v59 = vrot.slane %v461_v58, 4 }
 0xbdb   :  { %v899_v60 = vpop.f32.mrf.mxu1 }
 0xbdc   :  { %v470_v61 = vadd.f32 %v468_v59, %v1130_v18 }
 0xbdd   :  { %v464_v62 = vpop.f32.mrf.mxu1 }
 0xbde   :  { %v471_v63 = vmul.f32 %v470_v61, %v1132_v22 }
 0xbdf   :  { %v900_v1 = vpop.f32.mrf.mxu1 }
 0xbe0   :  { %959 = vtanh.f32 %v471_v63 }
 0xbed   :  { %v960_v2 = vpop.eup %959 }
 0xbee   :  { %v473_v3 = vmul.f32 %v960_v2, %v1132_v22 }
 0xbf0   :  { %v474_v4 = vadd.f32 %v473_v3, %v1136_v31 }
 0xbf2   :  { %480 = vrot.lane.b32.xlu1 %v474_v4, %s1048_s0  ;;  %v478_v9 = vmul.f32 %v476_v7, %v474_v4 }
 0xc64   :  { %v481_v5 = vpop.permute.xlu1 %480 }
 0xc65   :  { %v483_v6 = vmul.f32 %v481_v5, %v474_v4 }
 0xc67   :  { %485 = vrot.lane.b32.xlu0 %v483_v6, %s1049_s2 }
 0xcd9   :  { %v486_v10 = vpop.permute.xlu0 %485 }
 0xcda   :  { %v488_v12 = vadd.f32 %v486_v10, %v478_v9 }
 0xcdc   :  { %961 = vtanh.f32 %v488_v12 }
 0xce9   :  { %v962_v13 = vpop.eup %961 }
 0xcea   :  { %491 = vrot.lane.b32.xlu1 %v962_v13, %s1048_s0 }
 0xd5c   :  { %v492_v14 = vpop.permute.xlu1 %491 }
 0xd5d   :  { %v494_v15 = vmul.f32 %v492_v14, %v474_v4 }
 0xd5f   :  { %v495_v16 = vpack.c.bf16 %v494_v15, %v494_v15  ;;  %v732_v17 = vsel %vm731_vm9, %v730_v54, %v494_v15 }
 0xd61   :  { %v497_v19 = vrot.slane %v495_v16, 2 }
 0xd63   :  { %498 = vrot.lane.b32.xlu0 %v497_v19, %s1049_s2 }
 0xdd5   :  { %v499_v20 = vpop.permute.xlu0 %498 }
 0xdd6   :  { %906 = vmatmul.mubr.msk.bf16.vlgmr.msra.gmra.mxu0 %vm119_vm2, %v499_v20 }
 0xdd7   :  { %918 = vmatpush3.bf16.msra.mxu0 %v1105_v8  ;;  %921 = vmatprep.mubr.msk.bf16.mxu0 %vm1046_vm0, %v1045_v0 }
 0xdd8   :  { %919 = vmatprep.subr.bf16.mxu0 %v1045_v0 }
 0xddb   :  { %920 = vmatpush3.bf16.msra.mxu0 %v1111_v11  ;;  %v552_v11 = vrot.slane %v488_v12, 7 }
 0xe96   :  { %v537_v21 = vpop.f32.mrf.mxu0 }
 0xe97   :  { %v544_v23 = vrot.slane %v537_v21, 3 }
 0xe98   :  { %v907_v24 = vpop.f32.mrf.mxu0 }
 0xe99   :  { %v546_v25 = vadd.f32 %v544_v23, %v1130_v18  ;;  %v742_v24 = vld [vmem:[%s1264_s3 + $0x10] sm:$0xff] }
 0xe9a   :  { %v540_v26 = vpop.f32.mrf.mxu0 }
 0xe9b   :  { %v547_v27 = vmul.f32 %v546_v25, %v1132_v22  ;;  %v741_v26 = vld [vmem:[%s1264_s3 + $0x8] sm:$0xff] }
 0xe9c   :  { %v908_v28 = vpop.f32.mrf.mxu0 }
 0xe9d   :  { %963 = vtanh.f32 %v547_v27 }
 0xeaa   :  { %v964_v29 = vpop.eup %963 }
 0xeab   :  { %v549_v8 = vmul.f32 %v964_v29, %v1132_v22 }
 0xead   :  { %v550_v30 = vadd.f32 %v549_v8, %v1136_v31 }
 0xeaf   :  { %556 = vrot.lane.b32.xlu1 %v550_v30, %s1048_s0  ;;  %v554_v34 = vmul.f32 %v552_v11, %v550_v30  ;;  %v824_v11 = vld [vmem:[#allocation5 + $0x1] ss:$0 sm:$0xff] }
 0xf21   :  { %v557_v32 = vpop.permute.xlu1 %556 }
 0xf22   :  { %v559_v33 = vmul.f32 %v557_v32, %v550_v30 }
 0xf24   :  { %561 = vrot.lane.b32.xlu0 %v559_v33, %s1049_s2 }
 0xf96   :  { %v562_v35 = vpop.permute.xlu0 %561 }
 0xf97   :  { %v564_v36 = vadd.f32 %v562_v35, %v554_v34 }
 0xf99   :  { %965 = vtanh.f32 %v564_v36  ;;  %v630_v57 = vrot.slane %v564_v36, 7 }
 0xfa6   :  { %v966_v37 = vpop.eup %965 }
 0xfa7   :  { %567 = vrot.lane.b32.xlu1 %v966_v37, %s1048_s0 }
0x1019   :  { %v568_v38 = vpop.permute.xlu1 %567 }
0x101a   :  { %v570_v39 = vmul.f32 %v568_v38, %v550_v30 }
0x101c   :  { %v571_v40 = vpack.c.bf16 %v570_v39, %v570_v39  ;;  %v734_v41 = vsel %vm733_vm10, %v732_v17, %v570_v39 }
0x101e   :  { %v573_v42 = vshrl.u32 %v571_v40, 16 }
0x1020   :  { %v575_v43 = vrot.slane %v573_v42, 2 }
0x1022   :  { %576 = vrot.lane.b32.xlu0 %v575_v43, %s1049_s2 }
0x1094   :  { %v577_v44 = vpop.permute.xlu0 %576 }
0x1095   :  { %914 = vmatmul.mubr.msk.bf16.vlgmr.msra.gmra.mxu1 %vm119_vm2, %v577_v44 }
0x1096   :  { %929 = vmatprep.mubr.msk.bf16.mxu1 %vm1046_vm0, %v1045_v0 }
0x1155   :  { %v615_v45 = vpop.f32.mrf.mxu1 }
0x1156   :  { %v622_v46 = vrot.slane %v615_v45, 2 }
0x1157   :  { %v915_v47 = vpop.f32.mrf.mxu1 }
0x1158   :  { %v624_v48 = vadd.f32 %v622_v46, %v1130_v18 }
0x1159   :  { %v618_v49 = vpop.f32.mrf.mxu1 }
0x115a   :  { %v625_v50 = vmul.f32 %v624_v48, %v1132_v22 }
0x115b   :  { %v916_v51 = vpop.f32.mrf.mxu1 }
0x115c   :  { %967 = vtanh.f32 %v625_v50 }
0x1169   :  { %v968_v52 = vpop.eup %967 }
0x116a   :  { %v627_v53 = vmul.f32 %v968_v52, %v1132_v22 }
0x116c   :  { %v628_v54 = vadd.f32 %v627_v53, %v1136_v31 }
0x116e   :  { %634 = vrot.lane.b32.xlu1 %v628_v54, %s1048_s0  ;;  %v632_v58 = vmul.f32 %v630_v57, %v628_v54 }
0x11e0   :  { %v635_v55 = vpop.permute.xlu1 %634 }
0x11e1   :  { %v637_v56 = vmul.f32 %v635_v55, %v628_v54 }
0x11e3   :  { %639 = vrot.lane.b32.xlu0 %v637_v56, %s1049_s2 }
0x1255   :  { %v640_v59 = vpop.permute.xlu0 %639 }
0x1256   :  { %v642_v60 = vadd.f32 %v640_v59, %v632_v58 }
0x1258   :  { %969 = vtanh.f32 %v642_v60  ;;  %v706_v20 = vrot.slane %v642_v60, 7 }
0x1265   :  { %v970_v61 = vpop.eup %969 }
0x1266   :  { %645 = vrot.lane.b32.xlu1 %v970_v61, %s1048_s0 }
0x12d8   :  { %v646_v62 = vpop.permute.xlu1 %645 }
0x12d9   :  { %v648_v63 = vmul.f32 %v646_v62, %v628_v54 }
0x12db   :  { %v649_v1 = vpack.c.bf16 %v648_v63, %v648_v63  ;;  %v736_v2 = vsel %vm735_vm11, %v734_v41, %v648_v63 }
0x12dd   :  { %v651_v3 = vrot.slane %v649_v1, 3 }
0x12df   :  { %652 = vrot.lane.b32.xlu0 %v651_v3, %s1049_s2 }
0x1351   :  { %v653_v4 = vpop.permute.xlu0 %652 }
0x1352   :  { %922 = vmatmul.mubr.msk.bf16.vlgmr.msra.gmra.mxu0 %vm119_vm2, %v653_v4 }
0x1412   :  { %v691_v5 = vpop.f32.mrf.mxu0 }
0x1413   :  { %v698_v6 = vrot.slane %v691_v5, 1 }
0x1414   :  { %v923_v7 = vpop.f32.mrf.mxu0 }
0x1415   :  { %v700_v9 = vadd.f32 %v698_v6, %v1130_v18 }
0x1416   :  { %v694_v10 = vpop.f32.mrf.mxu0 }
0x1417   :  { %v701_v12 = vmul.f32 %v700_v9, %v1132_v22 }
0x1418   :  { %v924_v13 = vpop.f32.mrf.mxu0 }
0x1419   :  { %971 = vtanh.f32 %v701_v12 }
0x1426   :  { %v972_v14 = vpop.eup %971 }
0x1427   :  { %v703_v15 = vmul.f32 %v972_v14, %v1132_v22  ;;  %v743_v22 = vld [vmem:[%s1264_s3 + $0x18] sm:$0xff] }
0x1428   :  { %v745_v25 = vpack.c.bf16 %v743_v22, %v742_v24 }
0x1429   :  { %v704_v16 = vadd.f32 %v703_v15, %v1136_v31  ;;  %v740_v31 = vld [vmem:[%s1264_s3] sm:$0xff]  ;;  %s1050_s3 = smov [#allocation7]  }
0x142a   :  { %926 = vmatpush3.bf16.msra.mxu1 %v745_v25  ;;  %v744_v27 = vpack.c.bf16 %v741_v26, %v740_v31  ;;  %s804_s21 = sshll.u32 %s1050_s3, 4  ;;  %s805_s21 = int_to_ptr.vmem [resolvable:$true] %s804_s21 }
0x142b   :  { %710 = vrot.lane.b32.xlu1 %v704_v16, %s1048_s0  ;;  %v708_v21 = vmul.f32 %v706_v20, %v704_v16  ;;  %927 = vmatprep.subr.bf16.mxu1 %v1045_v0  ;;  %s1015_s22 = scalar_lea.vmem %s805_s21, 128  ;;  %p1020_p11 = scmp.lt.s32.totalorder %s805_s21, %s805_s21 }
0x142c   :  { %p1016_p10 = scmp.ne.s32.totalorder %s805_s21, %s1015_s22  ;;  %p1021_p12 = scmp.lt.s32.totalorder %s1015_s22, %s1015_s22 }
0x142e   :  { %928 = vmatpush3.bf16.msra.mxu1 %v744_v27  ;;  %p1022_p13 = por %p1021_p12, %p1020_p11 }
0x1430   :  { %p1023_p0 = pnand %p1022_p13, %p1016_p10 }
0x149d   :  { %v711_v17 = vpop.permute.xlu1 %710 }
0x149e   :  { %v713_v19 = vmul.f32 %v711_v17, %v704_v16 }
0x14a0   :  { %715 = vrot.lane.b32.xlu0 %v713_v19, %s1049_s2 }
0x1512   :  { %v716_v23 = vpop.permute.xlu0 %715 }
0x1513   :  { %v718_v18 = vadd.f32 %v716_v23, %v708_v21 }
0x1515   :  { %973 = vtanh.f32 %v718_v18 }
0x1522   :  { %v974_v28 = vpop.eup %973 }
0x1523   :  { %721 = vrot.lane.b32.xlu1 %v974_v28, %s1048_s0 }
0x1595   :  { %v722_v29 = vpop.permute.xlu1 %721 }
0x1596   :  { %v724_v8 = vmul.f32 %v722_v29, %v704_v16 }
0x1598   :  { %v738_v30 = vsel %vm737_vm12, %v736_v2, %v724_v8 }
0x1599   :  { %v739_v32 = vpack.c.bf16 %v738_v30, %v738_v30 }
0x159b   :  { %751 = vrot.lane.b32.xlu0 %v739_v32, %s1049_s2 }
0x160d   :  { %v752_v33 = vpop.permute.xlu0 %751 }
0x160e   :  { %930 = vmatmul.mubr.msk.bf16.vlgmr.msra.gmra.mxu1 %vm119_vm2, %v752_v33 }
0x16ce   :  { %v790_v34 = vpop.f32.mrf.mxu1 }
0x16cf   :  { %v791_v0 = vadd.f32 %v824_v11, %v790_v34 }
0x16d0   :  { %v931_v35 = vpop.f32.mrf.mxu1 }
0x16d1   :  { %797 = vst.msk [vmem:[#allocation7] sm:$0xff] %vm796_vm13, %v791_v0 }
0x16d2   :  { %v793_v36 = vpop.f32.mrf.mxu1 }
0x16d3   :  { %1026 = shalt.err (!%p1023_p0)
}
0x16d4   :  { %807 = dma.vmem_to_hbm [thread:$0]  %s805_s21, 128, %s1266_s5, [#allocation4]   ;;  %v932_v37 = vpop.f32.mrf.mxu1 }
0x16d5   :  { %1039 = dma.done.wait [#allocation4], 128  }
0x16d6   :  { %1040 = vsyncadd [#allocation4], 4294967168 }
0x16d7   :  { %811 = vsyncpa [#allocation3], 1 }
0x16d8   :  { %812 = vsyncpa [#allocation6], 1 }
0x16d9   :  { %813 = vsyncpa [#allocation4], 1 }

</bundles_post_ra>
